<compile_context>
chip_gen: v7x
topology: tpu7x:2x2x1
jax: 0.10.0
libtpu: 0.0.40
codegen_flags: <defaults>
</compile_context>

<pallas_src>
import functools

import jax
import jax.numpy as jnp
from jax import lax
from jax.experimental import pallas as pl
from jax.experimental.pallas import tpu as pltpu

BN_EPS = 1e-5


def _vmem_limit_bytes():
    """Generation-aware VMEM budget: ~half of physical VMEM, capped at 96 MiB.

    v5e/v6e (128 MiB physical) -> 64 MiB; v7x (64 MiB physical) -> 32 MiB.
    Falls back to a conservative 32 MiB if the query is unavailable.
    """
    try:
        info = pltpu.get_tpu_info()
        cap = int(getattr(info, "vmem_capacity_bytes", 0) or 0)
        if cap > 0:
            return int(min(cap // 2, 96 * 1024 * 1024))
    except Exception:
        pass
    return 32 * 1024 * 1024


def _conv1x1(w_f32, x):
    """(Cout, Cin) f32 weights @ (Cin, S) activation -> (Cout, S) f32.

    Tiny channel counts: unrolled broadcast-FMAs on the VPU (MXU issue/drain
    overhead dominates).  Otherwise MXU; bf16 operands are fed when the
    activation is bf16 (f32 accumulation via preferred_element_type).
    """
    cout, cin = w_f32.shape
    if cin <= 16:
        xf = x.astype(jnp.float32)
        acc = w_f32[:, 0:1] * xf[0:1, :]
        for k in range(1, cin):
            acc = acc + w_f32[:, k:k + 1] * xf[k:k + 1, :]
        return acc
    if x.dtype == jnp.bfloat16:
        return jnp.dot(w_f32.astype(jnp.bfloat16), x,
                       preferred_element_type=jnp.float32)
    return jnp.dot(w_f32, x.astype(jnp.float32),
                   preferred_element_type=jnp.float32)


def _for_each(n, body):
    """Static unroll for small trip counts (LLO visibility), scf.for otherwise."""
    if n <= 8:
        for b in range(n):
            body(b)
    else:
        pl.loop(0, n)(body)


# --------------------------------------------------------------------------
# Fused single-pass kernel: whole (N, Cin, S) block resident in VMEM.
# --------------------------------------------------------------------------
def _make_fused_kernel(n, inv_r):
    def kernel(x_ref, w_ref, gamma_ref, beta_ref, o_ref, sum_sc, sq_sc):
        # x_ref: (n, Cin, S)   w_ref: (Cout, Cin) f32
        # gamma/beta: (Cout, 1) f32   o_ref: (n, Cout, S)
        # sum_sc / sq_sc: (Cout, 1) f32 scratch accumulators.
        sum_sc[...] = jnp.zeros_like(sum_sc)
        sq_sc[...] = jnp.zeros_like(sq_sc)
        w = w_ref[...]

        def stats_body(b):
            y = _conv1x1(w, x_ref[b])                       # (Cout, S) f32
            sum_sc[...] += jnp.sum(y, axis=1, keepdims=True)
            sq_sc[...] += jnp.sum(y * y, axis=1, keepdims=True)

        _for_each(n, stats_body)

        mean = sum_sc[...] * inv_r
        # NOTE: E[y^2] - E[y]^2 in f32; clamped at 0 to absorb rounding.
        var = jnp.maximum(sq_sc[...] * inv_r - mean * mean, 0.0)
        inv_std = lax.rsqrt(var + BN_EPS)
        scale = gamma_ref[...] * inv_std                    # (Cout, 1)
        shift = beta_ref[...] - mean * scale                # (Cout, 1)
        w_s = w * scale                                     # fold scale into W

        def apply_body(b):
            y = _conv1x1(w_s, x_ref[b])                     # (Cout, S) f32
            o_ref[b] = jnp.maximum(y + shift, 0.0).astype(o_ref.dtype)

        _for_each(n, apply_body)

    return kernel


# --------------------------------------------------------------------------
# Two-pass kernels (large problems).
# --------------------------------------------------------------------------
def _stats_y_kernel(x_ref, w_ref, sum_ref, sq_ref):
    """cin <= 16: accumulate per-channel sum / sumsq of y = W @ x directly."""
    b = pl.program_id(1)
    s = pl.program_id(2)

    @pl.when((b == 0) & (s == 0))
    def _():
        sum_ref[...] = jnp.zeros_like(sum_ref)
        sq_ref[...] = jnp.zeros_like(sq_ref)

    y = _conv1x1(w_ref[...], x_ref[0])                      # (Cout, tile_s) f32
    sum_ref[0] += jnp.sum(y, axis=1, keepdims=True)
    sq_ref[0] += jnp.sum(y * y, axis=1, keepdims=True)


def _stats_moments_kernel(x_ref, sx_ref, g_ref):
    """cin > 16: accumulate sum_x (Cin,1) and Gram x @ x^T (Cin,Cin) on the MXU.

    Per-tile work is independent of Cout -> pass 1 runs at DMA roofline.
    """
    b = pl.program_id(1)
    s = pl.program_id(2)

    @pl.when((b == 0) & (s == 0))
    def _():
        sx_ref[...] = jnp.zeros_like(sx_ref)
        g_ref[...] = jnp.zeros_like(g_ref)

    x = x_ref[0]                                            # (Cin, tile_s)
    xf = x.astype(jnp.float32)
    sx_ref[0] += jnp.sum(xf, axis=1, keepdims=True)
    g_ref[0] += lax.dot_general(x, x, (((1,), (1,)), ((), ())),
                                preferred_element_type=jnp.float32)


def _apply_kernel(x_ref, ws_ref, shift_ref, o_ref):
    """out = relu(W_scaled @ x + shift): single add + max epilogue."""
    y = _conv1x1(ws_ref[...], x_ref[0])                     # (Cout, tile_s) f32
    o_ref[0] = jnp.maximum(y + shift_ref[...], 0.0).astype(o_ref.dtype)


def _pick_spatial_tile(hw_pad, cin, cout, in_item, out_item, vmem_limit):
    """Largest 128-multiple divisor of hw_pad whose pipelined working set
    (2 input + 2 output blocks) fits the budget, with the input block capped
    at ~4 MiB (diminishing DMA-efficiency returns beyond that)."""
    m = hw_pad // 128
    budget = (vmem_limit * 6) // 10
    best = 128
    for d in range(1, m + 1):
        if m % d:
            continue
        t = 128 * d
        blk_in = cin * t * in_item
        blk_out = cout * t * out_item
        if blk_in > (4 << 20):
            continue
        if 2 * (blk_in + blk_out) > budget:
            continue
        best = max(best, t)
    return best


@functools.partial(jax.jit, static_argnames=("force_two_pass",))
def node3_forward(x_nchw, conv_w, conv_b, bn_gamma, bn_beta, *,
                  force_two_pass=False):
    """x_nchw: (N, Cin, H, W); conv_w: (Cout, Cin, 1, 1); others: (Cout,)."""
    del conv_b  # cancelled exactly by training-mode BN mean subtraction
    n, cin, h, w = x_nchw.shape
    cout = conv_w.shape[0]
    hw = h * w
    hw_pad = ((hw + 127) // 128) * 128          # lane-dense spatial extent
    out_dtype = x_nchw.dtype
    vmem_limit = _vmem_limit_bytes()

    x3 = x_nchw.reshape(n, cin, hw)             # pure reshape, no transpose
    if hw_pad != hw:
        # Zero padding is exact for the statistics: W @ 0 contributes nothing
        # to sum / sumsq / sum_x / Gram; r_total below counts real elements.
        x3 = jnp.pad(x3, ((0, 0), (0, 0), (0, hw_pad - hw)))
    w_mat = conv_w.reshape(cout, cin).astype(jnp.float32)
    gamma_col = bn_gamma.astype(jnp.float32).reshape(cout, 1)
    beta_col = bn_beta.astype(jnp.float32).reshape(cout, 1)
    inv_r = 1.0 / float(n * hw)

    in_item = x3.dtype.itemsize
    out_item = jnp.dtype(out_dtype).itemsize
    w_bytes = cout * cin * 4

    # ---- fused single-pass path: whole problem resident in VMEM -----------
    in_bytes = n * cin * hw_pad * in_item
    out_bytes = n * cout * hw_pad * out_item
    temp_bytes = (cin + 2 * cout) * hw_pad * 4
    fused_need = 2 * (in_bytes + out_bytes) + temp_bytes + w_bytes + (1 << 20)
    if (not force_two_pass) and fused_need <= vmem_limit // 2:
        out3 = pl.pallas_call(
            _make_fused_kernel(n, inv_r),
            out_shape=jax.ShapeDtypeStruct((n, cout, hw_pad), out_dtype),
            grid_spec=pltpu.PrefetchScalarGridSpec(
                num_scalar_prefetch=0,
                grid=(1,),
                in_specs=[
                    pl.BlockSpec((n, cin, hw_pad), lambda i: (0, 0, 0)),
                    pl.BlockSpec((cout, cin), lambda i: (0, 0)),
                    pl.BlockSpec((cout, 1), lambda i: (0, 0)),
                    pl.BlockSpec((cout, 1), lambda i: (0, 0)),
                ],
                out_specs=pl.BlockSpec((n, cout, hw_pad), lambda i: (0, 0, 0)),
                scratch_shapes=[pltpu.VMEM((cout, 1), jnp.float32),
                                pltpu.VMEM((cout, 1), jnp.float32)],
            ),
            compiler_params=pltpu.CompilerParams(
                dimension_semantics=("arbitrary",),
                vmem_limit_bytes=vmem_limit,
            ),
        )(x3, w_mat, gamma_col, beta_col)
        return out3[:, :, :hw].reshape(n, cout, h, w)

    # ---- two-pass path -----------------------------------------------------
    tile_s = _pick_spatial_tile(hw_pad, cin, cout, in_item, out_item, vmem_limit)
    n_tiles = hw_pad // tile_s
    p = 2 if (n_tiles % 2 == 0 and n_tiles >= 2) else 1
    spt = n_tiles // p                          # spatial tiles per partition

    x_stats_spec = pl.BlockSpec((1, cin, tile_s),
                                lambda pi, b, s: (b, 0, pi * spt + s))
    stats_params = pltpu.CompilerParams(
        dimension_semantics=("parallel", "arbitrary", "arbitrary"),
        vmem_limit_bytes=vmem_limit,
    )

    # ---- pass 1: per-channel statistics (per-partition partials) ----------
    if cin <= 16:
        sums_p, sqs_p = pl.pallas_call(
            _stats_y_kernel,
            out_shape=(jax.ShapeDtypeStruct((p, cout, 1), jnp.float32),
                       jax.ShapeDtypeStruct((p, cout, 1), jnp.float32)),
            grid_spec=pltpu.PrefetchScalarGridSpec(
                num_scalar_prefetch=0,
                grid=(p, n, spt),
                in_specs=[x_stats_spec,
                          pl.BlockSpec((cout, cin), lambda pi, b, s: (0, 0))],
                out_specs=(
                    pl.BlockSpec((1, cout, 1), lambda pi, b, s: (pi, 0, 0)),
                    pl.BlockSpec((1, cout, 1), lambda pi, b, s: (pi, 0, 0)),
                ),
            ),
            compiler_params=stats_params,
        )(x3, w_mat)
        sum_y = jnp.sum(sums_p, axis=0)                       # (Cout, 1)
        sumsq_y = jnp.sum(sqs_p, axis=0)                      # (Cout, 1)
    else:
        sx_p, g_p = pl.pallas_call(
            _stats_moments_kernel,
            out_shape=(jax.ShapeDtypeStruct((p, cin, 1), jnp.float32),
                       jax.ShapeDtypeStruct((p, cin, cin), jnp.float32)),
            grid_spec=pltpu.PrefetchScalarGridSpec(
                num_scalar_prefetch=0,
                grid=(p, n, spt),
                in_specs=[x_stats_spec],
                out_specs=(
                    pl.BlockSpec((1, cin, 1), lambda pi, b, s: (pi, 0, 0)),
                    pl.BlockSpec((1, cin, cin), lambda pi, b, s: (pi, 0, 0)),
                ),
            ),
            compiler_params=stats_params,
        )(x3)
        sx = jnp.sum(sx_p, axis=0)                            # (Cin, 1)
        gram = jnp.sum(g_p, axis=0)                           # (Cin, Cin)
        sum_y = w_mat @ sx                                    # (Cout, 1)
        sumsq_y = jnp.sum((w_mat @ gram) * w_mat, axis=1, keepdims=True)

    # ---- fold BN stats + affine into scaled weight + shift -----------------
    mean = sum_y * inv_r
    # NOTE: E[y^2] - E[y]^2 in f32; clamped at 0 to absorb rounding.
    var = jnp.maximum(sumsq_y * inv_r - mean * mean, 0.0)
    inv_std = lax.rsqrt(var + BN_EPS)
    scale = gamma_col * inv_std                               # (Cout, 1)
    shift = beta_col - mean * scale                           # (Cout, 1)
    w_scaled = w_mat * scale                                  # (Cout, Cin)

    # ---- pass 2: conv + BN + ReLU, fully parallel ---------------------------
    out3 = pl.pallas_call(
        _apply_kernel,
        out_shape=jax.ShapeDtypeStruct((n, cout, hw_pad), out_dtype),
        grid_spec=pltpu.PrefetchScalarGridSpec(
            num_scalar_prefetch=0,
            grid=(n, n_tiles),
            in_specs=[
                pl.BlockSpec((1, cin, tile_s), lambda b, s: (b, 0, s)),
                pl.BlockSpec((cout, cin), lambda b, s: (0, 0)),
                pl.BlockSpec((cout, 1), lambda b, s: (0, 0)),
            ],
            out_specs=pl.BlockSpec((1, cout, tile_s), lambda b, s: (b, 0, s)),
        ),
        compiler_params=pltpu.CompilerParams(
            dimension_semantics=("parallel", "parallel"),
            vmem_limit_bytes=vmem_limit,
        ),
    )(x3, w_scaled, shift)

    return out3[:, :, :hw].reshape(n, cout, h, w)


if __name__ == "__main__":
    key = jax.random.PRNGKey(0)
    k_x, k_w, k_b = jax.random.split(key, 3)

    N, CIN, COUT, H, W = 2, 3, 3, 16, 16

    x = jax.random.normal(k_x, (N, CIN, H, W), dtype=jnp.float32)

    # Deterministic parameter init (synthetic, PyTorch-like scales)
    fan_in = CIN * 1 * 1
    bound = 1.0 / (fan_in ** 0.5)
    conv_w = jax.random.uniform(k_w, (COUT, CIN, 1, 1), jnp.float32, -bound, bound)
    conv_b = jax.random.uniform(k_b, (COUT,), jnp.float32, -bound, bound)
    bn_gamma = jnp.ones((COUT,), jnp.float32)   # BatchNorm2d default init
    bn_beta = jnp.zeros((COUT,), jnp.float32)

    # Reference in plain JAX (conv1x1 + training-mode BN + ReLU)
    y_ref = jnp.einsum("nchw,oc->nohw", x, conv_w.reshape(COUT, CIN)) \
        + conv_b.reshape(1, COUT, 1, 1)
    mean = jnp.mean(y_ref, axis=(0, 2, 3), keepdims=True)
    var = jnp.mean((y_ref - mean) ** 2, axis=(0, 2, 3), keepdims=True)
    y_hat = (y_ref - mean) / jnp.sqrt(var + BN_EPS)
    ref = jnp.maximum(y_hat * bn_gamma.reshape(1, COUT, 1, 1)
                      + bn_beta.reshape(1, COUT, 1, 1), 0.0)

    # Fused single-pass path (picked automatically at this size).
    out = node3_forward(x, conv_w, conv_b, bn_gamma, bn_beta)
    jax.block_until_ready(out)
    assert out.shape == (N, COUT, H, W)
    assert jnp.allclose(out, ref, atol=1e-4, rtol=1e-4)

    # Also exercise the tiled two-pass path at the same small size.
    out2 = node3_forward(x, conv_w, conv_b, bn_gamma, bn_beta,
                         force_two_pass=True)
    jax.block_until_ready(out2)
    assert jnp.allclose(out2, ref, atol=1e-4, rtol=1e-4)

    print("KERNEL_OK")
</pallas_src>

<mosaic_0001>
module attributes {stable_mosaic.version = 11 : i64} {
  func.func @kernel(%arg0: i32, %arg1: memref<2x3x256xf32, #tpu.memory_space<vmem>>, %arg2: memref<3x3xf32, #tpu.memory_space<vmem>>, %arg3: memref<3x1xf32, #tpu.memory_space<vmem>>, %arg4: memref<3x1xf32, #tpu.memory_space<vmem>>, %arg5: memref<2x3x256xf32, #tpu.memory_space<vmem>>, %arg6: memref<3x1xf32, #tpu.memory_space<vmem>>, %arg7: memref<3x1xf32, #tpu.memory_space<vmem>>) attributes {dimension_semantics = [#tpu.dimension_semantics<arbitrary>], iteration_bounds = array<i64: 1>, scalar_prefetch = 0 : i64, scratch_operands = 2 : i64, tpu.core_type = #tpu.core_type<tc>, window_params = [{pipeline_mode = #tpu.pipeline_mode<synchronous>, transform_indices = @transform_0, window_bounds = array<i64: 2, 3, 256>}, {pipeline_mode = #tpu.pipeline_mode<synchronous>, transform_indices = @transform_1, window_bounds = array<i64: 3, 3>}, {pipeline_mode = #tpu.pipeline_mode<synchronous>, transform_indices = @transform_2, window_bounds = array<i64: 3, 1>}, {pipeline_mode = #tpu.pipeline_mode<synchronous>, transform_indices = @transform_3, window_bounds = array<i64: 3, 1>}, {pipeline_mode = #tpu.pipeline_mode<synchronous>, transform_indices = @transform_4, window_bounds = array<i64: 2, 3, 256>}]} {
    %cst = arith.constant 0.000000e+00 : f32
    %0 = vector.broadcast %cst : f32 to vector<3x1xf32>
    %c0 = arith.constant 0 : index
    %c0_0 = arith.constant 0 : index
    %1 = vector.load %arg6[%c0, %c0_0] : memref<3x1xf32, #tpu.memory_space<vmem>>, vector<3x1xf32>
    tpu.vector_store %arg6[%c0, %c0_0], %0 {strides = array<i32>} : memref<3x1xf32, #tpu.memory_space<vmem>>, vector<3x1xf32>,
    %cst_1 = arith.constant 0.000000e+00 : f32
    %2 = vector.broadcast %cst_1 : f32 to vector<3x1xf32>
    %c0_2 = arith.constant 0 : index
    %c0_3 = arith.constant 0 : index
    %3 = vector.load %arg7[%c0_2, %c0_3] : memref<3x1xf32, #tpu.memory_space<vmem>>, vector<3x1xf32>
    tpu.vector_store %arg7[%c0_2, %c0_3], %2 {strides = array<i32>} : memref<3x1xf32, #tpu.memory_space<vmem>>, vector<3x1xf32>,
    %c0_4 = arith.constant 0 : index
    %c0_5 = arith.constant 0 : index
    %4 = vector.load %arg2[%c0_4, %c0_5] : memref<3x3xf32, #tpu.memory_space<vmem>>, vector<3x3xf32>
    %c0_6 = arith.constant 0 : index
    %c0_7 = arith.constant 0 : index
    %c0_8 = arith.constant 0 : index
    %5 = vector.load %arg1[%c0_6, %c0_7, %c0_8] : memref<2x3x256xf32, #tpu.memory_space<vmem>>, vector<1x3x256xf32>
    %6 = vector.shape_cast %5 : vector<1x3x256xf32> to vector<3x256xf32>
    %7 = vector.extract_strided_slice %4 {offsets = [0, 0], sizes = [3, 1], strides = [1, 1]} : vector<3x3xf32> to vector<3x1xf32>
    %8 = vector.extract_strided_slice %6 {offsets = [0, 0], sizes = [1, 256], strides = [1, 1]} : vector<3x256xf32> to vector<1x256xf32>
    %9 = vector.broadcast %7 : vector<3x1xf32> to vector<3x256xf32>
    %10 = vector.broadcast %8 : vector<1x256xf32> to vector<3x256xf32>
    %11 = arith.mulf %9, %10 : vector<3x256xf32>
    %12 = vector.extract_strided_slice %4 {offsets = [0, 1], sizes = [3, 1], strides = [1, 1]} : vector<3x3xf32> to vector<3x1xf32>
    %13 = vector.extract_strided_slice %6 {offsets = [1, 0], sizes = [1, 256], strides = [1, 1]} : vector<3x256xf32> to vector<1x256xf32>
    %14 = vector.broadcast %12 : vector<3x1xf32> to vector<3x256xf32>
    %15 = vector.broadcast %13 : vector<1x256xf32> to vector<3x256xf32>
    %16 = arith.mulf %14, %15 : vector<3x256xf32>
    %17 = arith.addf %11, %16 : vector<3x256xf32>
    %18 = vector.extract_strided_slice %4 {offsets = [0, 2], sizes = [3, 1], strides = [1, 1]} : vector<3x3xf32> to vector<3x1xf32>
    %19 = vector.extract_strided_slice %6 {offsets = [2, 0], sizes = [1, 256], strides = [1, 1]} : vector<3x256xf32> to vector<1x256xf32>
    %20 = vector.broadcast %18 : vector<3x1xf32> to vector<3x256xf32>
    %21 = vector.broadcast %19 : vector<1x256xf32> to vector<3x256xf32>
    %22 = arith.mulf %20, %21 : vector<3x256xf32>
    %23 = arith.addf %17, %22 : vector<3x256xf32>
    %c0_9 = arith.constant 0 : index
    %c0_10 = arith.constant 0 : index
    %24 = vector.load %arg6[%c0_9, %c0_10] : memref<3x1xf32, #tpu.memory_space<vmem>>, vector<3x1xf32>
    %cst_11 = arith.constant dense<0.000000e+00> : vector<3xf32>
    %25 = vector.multi_reduction <add>, %23, %cst_11 [1] : vector<3x256xf32> to vector<3xf32>
    %26 = vector.shape_cast %25 : vector<3xf32> to vector<3x1xf32>
    %27 = arith.addf %24, %26 : vector<3x1xf32>
    %c0_12 = arith.constant 0 : index
    %c0_13 = arith.constant 0 : index
    %28 = vector.load %arg6[%c0_12, %c0_13] : memref<3x1xf32, #tpu.memory_space<vmem>>, vector<3x1xf32>
    tpu.vector_store %arg6[%c0_12, %c0_13], %27 {strides = array<i32>} : memref<3x1xf32, #tpu.memory_space<vmem>>, vector<3x1xf32>,
    %c0_14 = arith.constant 0 : index
    %c0_15 = arith.constant 0 : index
    %29 = vector.load %arg7[%c0_14, %c0_15] : memref<3x1xf32, #tpu.memory_space<vmem>>, vector<3x1xf32>
    %30 = arith.mulf %23, %23 : vector<3x256xf32>
    %cst_16 = arith.constant dense<0.000000e+00> : vector<3xf32>
    %31 = vector.multi_reduction <add>, %30, %cst_16 [1] : vector<3x256xf32> to vector<3xf32>
    %32 = vector.shape_cast %31 : vector<3xf32> to vector<3x1xf32>
    %33 = arith.addf %29, %32 : vector<3x1xf32>
    %c0_17 = arith.constant 0 : index
    %c0_18 = arith.constant 0 : index
    %34 = vector.load %arg7[%c0_17, %c0_18] : memref<3x1xf32, #tpu.memory_space<vmem>>, vector<3x1xf32>
    tpu.vector_store %arg7[%c0_17, %c0_18], %33 {strides = array<i32>} : memref<3x1xf32, #tpu.memory_space<vmem>>, vector<3x1xf32>,
    %c1 = arith.constant 1 : index
    %c0_19 = arith.constant 0 : index
    %c0_20 = arith.constant 0 : index
    %35 = vector.load %arg1[%c1, %c0_19, %c0_20] : memref<2x3x256xf32, #tpu.memory_space<vmem>>, vector<1x3x256xf32>
    %36 = vector.shape_cast %35 : vector<1x3x256xf32> to vector<3x256xf32>
    %37 = vector.extract_strided_slice %4 {offsets = [0, 0], sizes = [3, 1], strides = [1, 1]} : vector<3x3xf32> to vector<3x1xf32>
    %38 = vector.extract_strided_slice %36 {offsets = [0, 0], sizes = [1, 256], strides = [1, 1]} : vector<3x256xf32> to vector<1x256xf32>
    %39 = vector.broadcast %37 : vector<3x1xf32> to vector<3x256xf32>
    %40 = vector.broadcast %38 : vector<1x256xf32> to vector<3x256xf32>
    %41 = arith.mulf %39, %40 : vector<3x256xf32>
    %42 = vector.extract_strided_slice %4 {offsets = [0, 1], sizes = [3, 1], strides = [1, 1]} : vector<3x3xf32> to vector<3x1xf32>
    %43 = vector.extract_strided_slice %36 {offsets = [1, 0], sizes = [1, 256], strides = [1, 1]} : vector<3x256xf32> to vector<1x256xf32>
    %44 = vector.broadcast %42 : vector<3x1xf32> to vector<3x256xf32>
    %45 = vector.broadcast %43 : vector<1x256xf32> to vector<3x256xf32>
    %46 = arith.mulf %44, %45 : vector<3x256xf32>
    %47 = arith.addf %41, %46 : vector<3x256xf32>
    %48 = vector.extract_strided_slice %4 {offsets = [0, 2], sizes = [3, 1], strides = [1, 1]} : vector<3x3xf32> to vector<3x1xf32>
    %49 = vector.extract_strided_slice %36 {offsets = [2, 0], sizes = [1, 256], strides = [1, 1]} : vector<3x256xf32> to vector<1x256xf32>
    %50 = vector.broadcast %48 : vector<3x1xf32> to vector<3x256xf32>
    %51 = vector.broadcast %49 : vector<1x256xf32> to vector<3x256xf32>
    %52 = arith.mulf %50, %51 : vector<3x256xf32>
    %53 = arith.addf %47, %52 : vector<3x256xf32>
    %c0_21 = arith.constant 0 : index
    %c0_22 = arith.constant 0 : index
    %54 = vector.load %arg6[%c0_21, %c0_22] : memref<3x1xf32, #tpu.memory_space<vmem>>, vector<3x1xf32>
    %cst_23 = arith.constant dense<0.000000e+00> : vector<3xf32>
    %55 = vector.multi_reduction <add>, %53, %cst_23 [1] : vector<3x256xf32> to vector<3xf32>
    %56 = vector.shape_cast %55 : vector<3xf32> to vector<3x1xf32>
    %57 = arith.addf %54, %56 : vector<3x1xf32>
    %c0_24 = arith.constant 0 : index
    %c0_25 = arith.constant 0 : index
    %58 = vector.load %arg6[%c0_24, %c0_25] : memref<3x1xf32, #tpu.memory_space<vmem>>, vector<3x1xf32>
    tpu.vector_store %arg6[%c0_24, %c0_25], %57 {strides = array<i32>} : memref<3x1xf32, #tpu.memory_space<vmem>>, vector<3x1xf32>,
    %c0_26 = arith.constant 0 : index
    %c0_27 = arith.constant 0 : index
    %59 = vector.load %arg7[%c0_26, %c0_27] : memref<3x1xf32, #tpu.memory_space<vmem>>, vector<3x1xf32>
    %60 = arith.mulf %53, %53 : vector<3x256xf32>
    %cst_28 = arith.constant dense<0.000000e+00> : vector<3xf32>
    %61 = vector.multi_reduction <add>, %60, %cst_28 [1] : vector<3x256xf32> to vector<3xf32>
    %62 = vector.shape_cast %61 : vector<3xf32> to vector<3x1xf32>
    %63 = arith.addf %59, %62 : vector<3x1xf32>
    %c0_29 = arith.constant 0 : index
    %c0_30 = arith.constant 0 : index
    %64 = vector.load %arg7[%c0_29, %c0_30] : memref<3x1xf32, #tpu.memory_space<vmem>>, vector<3x1xf32>
    tpu.vector_store %arg7[%c0_29, %c0_30], %63 {strides = array<i32>} : memref<3x1xf32, #tpu.memory_space<vmem>>, vector<3x1xf32>,
    %c0_31 = arith.constant 0 : index
    %c0_32 = arith.constant 0 : index
    %65 = vector.load %arg6[%c0_31, %c0_32] : memref<3x1xf32, #tpu.memory_space<vmem>>, vector<3x1xf32>
    %cst_33 = arith.constant 0.001953125 : f32
    %66 = vector.broadcast %cst_33 : f32 to vector<3x1xf32>
    %67 = arith.mulf %65, %66 : vector<3x1xf32>
    %c0_34 = arith.constant 0 : index
    %c0_35 = arith.constant 0 : index
    %68 = vector.load %arg7[%c0_34, %c0_35] : memref<3x1xf32, #tpu.memory_space<vmem>>, vector<3x1xf32>
    %cst_36 = arith.constant 0.001953125 : f32
    %69 = vector.broadcast %cst_36 : f32 to vector<3x1xf32>
    %70 = arith.mulf %68, %69 : vector<3x1xf32>
    %71 = arith.mulf %67, %67 : vector<3x1xf32>
    %72 = arith.subf %70, %71 : vector<3x1xf32>
    %cst_37 = arith.constant 0.000000e+00 : f32
    %73 = vector.broadcast %cst_37 : f32 to vector<3x1xf32>
    %74 = arith.maximumf %72, %73 : vector<3x1xf32>
    %cst_38 = arith.constant 9.99999974E-6 : f32
    %75 = vector.broadcast %cst_38 : f32 to vector<3x1xf32>
    %76 = arith.addf %74, %75 : vector<3x1xf32>
    %77 = math.rsqrt %76 : vector<3x1xf32>
    %c0_39 = arith.constant 0 : index
    %c0_40 = arith.constant 0 : index
    %78 = vector.load %arg3[%c0_39, %c0_40] : memref<3x1xf32, #tpu.memory_space<vmem>>, vector<3x1xf32>
    %79 = arith.mulf %78, %77 : vector<3x1xf32>
    %c0_41 = arith.constant 0 : index
    %c0_42 = arith.constant 0 : index
    %80 = vector.load %arg4[%c0_41, %c0_42] : memref<3x1xf32, #tpu.memory_space<vmem>>, vector<3x1xf32>
    %81 = arith.mulf %67, %79 : vector<3x1xf32>
    %82 = arith.subf %80, %81 : vector<3x1xf32>
    %83 = vector.broadcast %79 : vector<3x1xf32> to vector<3x3xf32>
    %84 = arith.mulf %4, %83 : vector<3x3xf32>
    %c0_43 = arith.constant 0 : index
    %c0_44 = arith.constant 0 : index
    %c0_45 = arith.constant 0 : index
    %85 = vector.load %arg1[%c0_43, %c0_44, %c0_45] : memref<2x3x256xf32, #tpu.memory_space<vmem>>, vector<1x3x256xf32>
    %86 = vector.shape_cast %85 : vector<1x3x256xf32> to vector<3x256xf32>
    %87 = vector.extract_strided_slice %84 {offsets = [0, 0], sizes = [3, 1], strides = [1, 1]} : vector<3x3xf32> to vector<3x1xf32>
    %88 = vector.extract_strided_slice %86 {offsets = [0, 0], sizes = [1, 256], strides = [1, 1]} : vector<3x256xf32> to vector<1x256xf32>
    %89 = vector.broadcast %87 : vector<3x1xf32> to vector<3x256xf32>
    %90 = vector.broadcast %88 : vector<1x256xf32> to vector<3x256xf32>
    %91 = arith.mulf %89, %90 : vector<3x256xf32>
    %92 = vector.extract_strided_slice %84 {offsets = [0, 1], sizes = [3, 1], strides = [1, 1]} : vector<3x3xf32> to vector<3x1xf32>
    %93 = vector.extract_strided_slice %86 {offsets = [1, 0], sizes = [1, 256], strides = [1, 1]} : vector<3x256xf32> to vector<1x256xf32>
    %94 = vector.broadcast %92 : vector<3x1xf32> to vector<3x256xf32>
    %95 = vector.broadcast %93 : vector<1x256xf32> to vector<3x256xf32>
    %96 = arith.mulf %94, %95 : vector<3x256xf32>
    %97 = arith.addf %91, %96 : vector<3x256xf32>
    %98 = vector.extract_strided_slice %84 {offsets = [0, 2], sizes = [3, 1], strides = [1, 1]} : vector<3x3xf32> to vector<3x1xf32>
    %99 = vector.extract_strided_slice %86 {offsets = [2, 0], sizes = [1, 256], strides = [1, 1]} : vector<3x256xf32> to vector<1x256xf32>
    %100 = vector.broadcast %98 : vector<3x1xf32> to vector<3x256xf32>
    %101 = vector.broadcast %99 : vector<1x256xf32> to vector<3x256xf32>
    %102 = arith.mulf %100, %101 : vector<3x256xf32>
    %103 = arith.addf %97, %102 : vector<3x256xf32>
    %104 = vector.broadcast %82 : vector<3x1xf32> to vector<3x256xf32>
    %105 = arith.addf %103, %104 : vector<3x256xf32>
    %cst_46 = arith.constant 0.000000e+00 : f32
    %106 = vector.broadcast %cst_46 : f32 to vector<3x256xf32>
    %107 = arith.maximumf %105, %106 : vector<3x256xf32>
    %c0_47 = arith.constant 0 : index
    %c0_48 = arith.constant 0 : index
    %c0_49 = arith.constant 0 : index
    %108 = vector.load %arg5[%c0_47, %c0_48, %c0_49] : memref<2x3x256xf32, #tpu.memory_space<vmem>>, vector<1x3x256xf32>
    %109 = vector.shape_cast %108 : vector<1x3x256xf32> to vector<3x256xf32>
    %110 = vector.shape_cast %107 : vector<3x256xf32> to vector<1x3x256xf32>
    tpu.vector_store %arg5[%c0_47, %c0_48, %c0_49], %110 {strides = array<i32>} : memref<2x3x256xf32, #tpu.memory_space<vmem>>, vector<1x3x256xf32>,
    %c1_50 = arith.constant 1 : index
    %c0_51 = arith.constant 0 : index
    %c0_52 = arith.constant 0 : index
    %111 = vector.load %arg1[%c1_50, %c0_51, %c0_52] : memref<2x3x256xf32, #tpu.memory_space<vmem>>, vector<1x3x256xf32>
    %112 = vector.shape_cast %111 : vector<1x3x256xf32> to vector<3x256xf32>
    %113 = vector.extract_strided_slice %84 {offsets = [0, 0], sizes = [3, 1], strides = [1, 1]} : vector<3x3xf32> to vector<3x1xf32>
    %114 = vector.extract_strided_slice %112 {offsets = [0, 0], sizes = [1, 256], strides = [1, 1]} : vector<3x256xf32> to vector<1x256xf32>
    %115 = vector.broadcast %113 : vector<3x1xf32> to vector<3x256xf32>
    %116 = vector.broadcast %114 : vector<1x256xf32> to vector<3x256xf32>
    %117 = arith.mulf %115, %116 : vector<3x256xf32>
    %118 = vector.extract_strided_slice %84 {offsets = [0, 1], sizes = [3, 1], strides = [1, 1]} : vector<3x3xf32> to vector<3x1xf32>
    %119 = vector.extract_strided_slice %112 {offsets = [1, 0], sizes = [1, 256], strides = [1, 1]} : vector<3x256xf32> to vector<1x256xf32>
    %120 = vector.broadcast %118 : vector<3x1xf32> to vector<3x256xf32>
    %121 = vector.broadcast %119 : vector<1x256xf32> to vector<3x256xf32>
    %122 = arith.mulf %120, %121 : vector<3x256xf32>
    %123 = arith.addf %117, %122 : vector<3x256xf32>
    %124 = vector.extract_strided_slice %84 {offsets = [0, 2], sizes = [3, 1], strides = [1, 1]} : vector<3x3xf32> to vector<3x1xf32>
    %125 = vector.extract_strided_slice %112 {offsets = [2, 0], sizes = [1, 256], strides = [1, 1]} : vector<3x256xf32> to vector<1x256xf32>
    %126 = vector.broadcast %124 : vector<3x1xf32> to vector<3x256xf32>
    %127 = vector.broadcast %125 : vector<1x256xf32> to vector<3x256xf32>
    %128 = arith.mulf %126, %127 : vector<3x256xf32>
    %129 = arith.addf %123, %128 : vector<3x256xf32>
    %130 = vector.broadcast %82 : vector<3x1xf32> to vector<3x256xf32>
    %131 = arith.addf %129, %130 : vector<3x256xf32>
    %cst_53 = arith.constant 0.000000e+00 : f32
    %132 = vector.broadcast %cst_53 : f32 to vector<3x256xf32>
    %133 = arith.maximumf %131, %132 : vector<3x256xf32>
    %c1_54 = arith.constant 1 : index
    %c0_55 = arith.constant 0 : index
    %c0_56 = arith.constant 0 : index
    %134 = vector.load %arg5[%c1_54, %c0_55, %c0_56] : memref<2x3x256xf32, #tpu.memory_space<vmem>>, vector<1x3x256xf32>
    %135 = vector.shape_cast %134 : vector<1x3x256xf32> to vector<3x256xf32>
    %136 = vector.shape_cast %133 : vector<3x256xf32> to vector<1x3x256xf32>
    tpu.vector_store %arg5[%c1_54, %c0_55, %c0_56], %136 {strides = array<i32>} : memref<2x3x256xf32, #tpu.memory_space<vmem>>, vector<1x3x256xf32>,
    return
  }
  func.func @transform_0(%arg0: i32) -> (i32, i32, i32) {
    %c0_i32 = arith.constant 0 : i32
    %c0_i32_0 = arith.constant 0 : i32
    %c0_i32_1 = arith.constant 0 : i32
    %c0_i32_2 = arith.constant 0 : i32
    return %c0_i32, %c0_i32_0, %c0_i32_1 : i32, i32, i32
  }
  func.func @transform_1(%arg0: i32) -> (i32, i32) {
    %c0_i32 = arith.constant 0 : i32
    %c0_i32_0 = arith.constant 0 : i32
    %c0_i32_1 = arith.constant 0 : i32
    return %c0_i32, %c0_i32_0 : i32, i32
  }
  func.func @transform_2(%arg0: i32) -> (i32, i32) {
    %c0_i32 = arith.constant 0 : i32
    %c0_i32_0 = arith.constant 0 : i32
    %c0_i32_1 = arith.constant 0 : i32
    return %c0_i32, %c0_i32_0 : i32, i32
  }
  func.func @transform_3(%arg0: i32) -> (i32, i32) {
    %c0_i32 = arith.constant 0 : i32
    %c0_i32_0 = arith.constant 0 : i32
    %c0_i32_1 = arith.constant 0 : i32
    return %c0_i32, %c0_i32_0 : i32, i32
  }
  func.func @transform_4(%arg0: i32) -> (i32, i32, i32) {
    %c0_i32 = arith.constant 0 : i32
    %c0_i32_0 = arith.constant 0 : i32
    %c0_i32_1 = arith.constant 0 : i32
    %c0_i32_2 = arith.constant 0 : i32
    return %c0_i32, %c0_i32_0, %c0_i32_1 : i32, i32, i32
  }
}

</mosaic_0001>

<bundles_post_ra>
// kernel: node3_forward.1
= control target key start
LH: loop header
LB: loop body
LE: loop exit
PB: predicated region body
PF: predicated region fallthrough
CT: control target
= control target key end

     0   :  { %v414_v0 = vmov 0   ;;  %v415_v2 = vmov 2   ;;  %v416_v3 = vmov 1   ;;  %vm17_vm0 = vcmask 2048   ;;  %s558_s1 = inlined_call_operand.vmem [shape: f32[3,3], index: 1, kind: input, shape index: {}]   ;;  %s559_s0 = inlined_call_operand.vmem [shape: f32[2,3,256], index: 0, kind: input, shape index: {}]   ;;  %s560_s2 = inlined_call_operand.vmem [shape: f32[3,1], index: 2, kind: input, shape index: {}]   ;;  %s561_s3 = inlined_call_operand.vmem [shape: f32[3,1], index: 3, kind: input, shape index: {}]   ;;  %s562_s4 = inlined_call_operand.vmem [shape: f32[2,3,256], index: 4, kind: output, shape index: {}]  }
   0x1   :  { %404 = vset.pattern.permute.xlu0 %v414_v0  ;;  %v447_v1 = vld [vmem:[%s558_s1] sm:$0x7]  ;;  %406 = vset.pattern.permute.xlu1 %v415_v2  ;;  %v417_v4 = vmov 0.0   ;;  %v28_v5 = vlaneseq  ;;  %v397_v11 = vld [vmem:[%s559_s0 + $0x8] sm:$0x77]  ;;  %vm101_vm1 = vcmask 1042432  }
   0x2   :  { %24 = vperm.xlu0 %404, %v447_v1   ;;  %75 = vperm.xlu1 %406, %v447_v1   ;;  %18 = vst.msk [vmem:[#allocation2] sm:$0x7] %vm17_vm0, %v417_v4  ;;  %19 = vst.msk [vmem:[#allocation3] sm:$0x7] %vm17_vm0, %v417_v4  ;;  %v21_v10 = vld [vmem:[%s559_s0] sm:$0x77] }
   0x3   :  { %v29_v6 = vshrl.u32 %v28_v5, 7 }
   0x5   :  { %v458_v7 = vsub.s32 0, %v29_v6  ;;  %v460_v8 = vsub.s32 4, %v29_v6  ;;  %v462_v9 = vsub.s32 2, %v29_v6  ;;  %v470_v12 = vsub.s32 6, %v29_v6 }
   0x6   :  { %405 = vset.pattern.permute.xlu0 %v416_v3  ;;  %407 = vset.pattern.permute.xlu1 %v414_v0  ;;  %v472_v13 = vsub.s32 1, %v29_v6  ;;  %v474_v14 = vsub.s32 5, %v29_v6 }
   0x7   :  { %49 = vperm.xlu0 %405, %v447_v1   ;;  %v31_v15 = vrot.slane %v21_v10, %v458_v7  ;;  %v35_v16 = vrot.slane %v21_v10, %v460_v8  ;;  %v125_v17 = vrot.slane %v397_v11, %v458_v7  ;;  %v129_v18 = vrot.slane %v397_v11, %v460_v8 }
   0x8   :  { %v81_v19 = vrot.slane %v21_v10, %v462_v9  ;;  %v85_v20 = vrot.slane %v21_v10, %v470_v12  ;;  %v167_v21 = vrot.slane %v397_v11, %v462_v9  ;;  %v171_v22 = vrot.slane %v397_v11, %v470_v12 }
   0x9   :  { %v55_v23 = vrot.slane %v21_v10, %v472_v13  ;;  %v59_v24 = vrot.slane %v21_v10, %v474_v14  ;;  %v145_v25 = vrot.slane %v397_v11, %v472_v13  ;;  %v149_v26 = vrot.slane %v397_v11, %v474_v14 }
   0xa   :  { %v41_v28 = vrot.slane %v31_v15, %v458_v7  ;;  %v45_v29 = vrot.slane %v35_v16, %v458_v7  ;;  %v135_v30 = vrot.slane %v125_v17, %v458_v7  ;;  %v139_v31 = vrot.slane %v129_v18, %v458_v7 }
   0xb   :  { %408 = vset.pattern.permute.xlu0 %v414_v0  ;;  %v91_v32 = vrot.slane %v81_v19, %v462_v9  ;;  %v95_v33 = vrot.slane %v85_v20, %v462_v9  ;;  %v177_v34 = vrot.slane %v167_v21, %v462_v9  ;;  %v181_v35 = vrot.slane %v171_v22, %v462_v9 }
   0xc   :  { %v65_v36 = vrot.slane %v55_v23, %v472_v13  ;;  %v69_v37 = vrot.slane %v59_v24, %v472_v13  ;;  %v155_v38 = vrot.slane %v145_v25, %v472_v13  ;;  %v159_v39 = vrot.slane %v149_v26, %v472_v13  ;;  %v100_v24 = vld [vmem:[#allocation2] sm:$0x7]  ;;  %v109_v26 = vld [vmem:[#allocation3] sm:$0x7] }
  0x81   :  { %v25_v27 = vpop.permute.xlu0 %24  ;;  %v76_v40 = vpop.permute.xlu1 %75 }
  0x82   :  { %v46_v41 = vmul.f32 %v41_v28, %v25_v27  ;;  %v47_v42 = vmul.f32 %v45_v29, %v25_v27  ;;  %v140_v43 = vmul.f32 %v135_v30, %v25_v27  ;;  %v141_v44 = vmul.f32 %v139_v31, %v25_v27 }
  0x83   :  { %v96_v46 = vmul.f32 %v91_v32, %v76_v40  ;;  %v97_v47 = vmul.f32 %v95_v33, %v76_v40  ;;  %v182_v48 = vmul.f32 %v177_v34, %v76_v40  ;;  %v183_v49 = vmul.f32 %v181_v35, %v76_v40 }
  0x86   :  { %v50_v45 = vpop.permute.xlu0 %49 }
  0x87   :  { %v70_v50 = vmul.f32 %v65_v36, %v50_v45  ;;  %v71_v51 = vmul.f32 %v69_v37, %v50_v45  ;;  %v160_v52 = vmul.f32 %v155_v38, %v50_v45  ;;  %v161_v53 = vmul.f32 %v159_v39, %v50_v45 }
  0x89   :  { %v72_v54 = vadd.f32 %v70_v50, %v46_v41  ;;  %v73_v55 = vadd.f32 %v71_v51, %v47_v42  ;;  %v162_v56 = vadd.f32 %v160_v52, %v140_v43  ;;  %v163_v57 = vadd.f32 %v161_v53, %v141_v44  ;;  %v213_v44 = vld [vmem:[%s560_s2] sm:$0x7] }
  0x8a   :  { %v215_v50 = vld [vmem:[%s561_s3] sm:$0x7] }
  0x8b   :  { %v98_v58 = vadd.f32 %v96_v46, %v72_v54  ;;  %v99_v59 = vadd.f32 %v97_v47, %v73_v55  ;;  %v184_v60 = vadd.f32 %v182_v48, %v162_v56  ;;  %v185_v61 = vadd.f32 %v183_v49, %v163_v57 }
  0x8d   :  { %v102_v62 = vsel %vm101_vm1, %v98_v58, 0.0  ;;  %v103_v63 = vsel %vm101_vm1, %v99_v59, 0.0  ;;  %v110_v4 = vmul.f32 %v98_v58, %v98_v58  ;;  %v111_v5 = vmul.f32 %v99_v59, %v99_v59 }
  0x8e   :  { %v104_v6 = vadd.f32 %v103_v63, %v102_v62  ;;  %v187_v10 = vsel %vm101_vm1, %v184_v60, 0.0  ;;  %v195_v11 = vmul.f32 %v184_v60, %v184_v60  ;;  %v188_v17 = vsel %vm101_vm1, %v185_v61, 0.0 }
  0x8f   :  { %v112_v15 = vsel %vm101_vm1, %v110_v4, 0.0  ;;  %v113_v16 = vsel %vm101_vm1, %v111_v5, 0.0  ;;  %v196_v18 = vmul.f32 %v185_v61, %v185_v61  ;;  %v189_v22 = vadd.f32 %v188_v17, %v187_v10 }
  0x90   :  { %105 = vadd.xlane.f32.xlu1 %v104_v6  ;;  %v114_v19 = vadd.f32 %v113_v16, %v112_v15  ;;  %v197_v20 = vsel %vm101_vm1, %v195_v11, 0.0 }
  0x91   :  { %v198_v21 = vsel %vm101_vm1, %v196_v18, 0.0 }
  0x92   :  { %115 = vadd.xlane.f32.xlu0 %v114_v19  ;;  %v199_v23 = vadd.f32 %v198_v21, %v197_v20 }
  0x94   :  { %190 = vadd.xlane.f32.xlu1 %v189_v22 }
  0x96   :  { %200 = vadd.xlane.f32.xlu0 %v199_v23 }
 0x11d   :  { %v106_v25 = vpop.xlane.xlu1 %105 }
 0x11e   :  { %v107_v27 = vadd.f32 %v106_v25, %v100_v24 }
 0x11f   :  { %v116_v28 = vpop.xlane.xlu0 %115 }
 0x120   :  { %108 = vst.msk [vmem:[#allocation2] sm:$0x7] %vm17_vm0, %v107_v27  ;;  %v117_v29 = vadd.f32 %v116_v28, %v109_v26 }
 0x121   :  { %v191_v31 = vpop.xlane.xlu1 %190 }
 0x122   :  { %118 = vst.msk [vmem:[#allocation3] sm:$0x7] %vm17_vm0, %v117_v29 }
 0x123   :  { %v201_v34 = vpop.xlane.xlu0 %200 }
 0x127   :  { %v186_v30 = vld [vmem:[#allocation2] sm:$0x7] }
 0x128   :  { %v192_v32 = vadd.f32 %v191_v31, %v186_v30 }
 0x129   :  { %v194_v33 = vld [vmem:[#allocation3] sm:$0x7] }
 0x12a   :  { %193 = vst.msk [vmem:[#allocation2] sm:$0x7] %vm17_vm0, %v192_v32  ;;  %v202_v35 = vadd.f32 %v201_v34, %v194_v33 }
 0x12c   :  { %203 = vst.msk [vmem:[#allocation3] sm:$0x7] %vm17_vm0, %v202_v35 }
 0x131   :  { %v204_v36 = vld [vmem:[#allocation2] sm:$0x7] }
 0x132   :  { %v205_v37 = vmul.f32 0.001953125, %v204_v36 }
 0x133   :  { %v206_v38 = vld [vmem:[#allocation3] sm:$0x7] }
 0x134   :  { %v207_v39 = vmul.f32 0.001953125, %v206_v38  ;;  %v208_v40 = vmul.f32 %v205_v37, %v205_v37 }
 0x136   :  { %v209_v41 = vsub.f32 %v207_v39, %v208_v40 }
 0x138   :  { %v210_v42 = vmax.f32 %v209_v41, 0.0 }
 0x13a   :  { %v211_v43 = vadd.f32 1e-05, %v210_v42 }
 0x13c   :  { %412 = vrsqrt.f32 %v211_v43 }
 0x146   :  { %v413_v45 = vpop.eup %412 }
 0x147   :  { %v214_v46 = vmul.f32 %v413_v45, %v213_v44 }
 0x149   :  { %220 = vperm.xlu1 %407, %v214_v46   ;;  %v216_v47 = vmul.f32 %v214_v46, %v205_v37 }
 0x14b   :  { %v217_v51 = vsub.f32 %v215_v50, %v216_v47 }
 0x14d   :  { %409 = vset.pattern.permute.xlu1 %v416_v3  ;;  %v224_v3 = vld [vmem:[%s559_s0] sm:$0x77] }
 0x14e   :  { %v258_v52 = vrot.slane %v224_v3, %v472_v13  ;;  %v234_v55 = vrot.slane %v224_v3, %v458_v7  ;;  %v284_v58 = vrot.slane %v224_v3, %v462_v9  ;;  %v288_v59 = vrot.slane %v224_v3, %v470_v12 }
 0x150   :  { %v268_v62 = vrot.slane %v258_v52, %v472_v13  ;;  %v244_v5 = vrot.slane %v234_v55, %v458_v7  ;;  %v298_v16 = vrot.slane %v288_v59, %v462_v9 }
 0x1c8   :  { %v221_v48 = vpop.permute.xlu1 %220 }
 0x1c9   :  { %v223_v49 = vmul.f32 %v221_v48, %v447_v1  ;;  %v398_v1 = vld [vmem:[%s559_s0 + $0x8] sm:$0x77] }
 0x1ca   :  { %v342_v53 = vrot.slane %v398_v1, %v472_v13  ;;  %v346_v54 = vrot.slane %v398_v1, %v474_v14  ;;  %v322_v56 = vrot.slane %v398_v1, %v458_v7  ;;  %v326_v57 = vrot.slane %v398_v1, %v460_v8 }
 0x1cb   :  { %252 = vperm.xlu1 %409, %v223_v49   ;;  %227 = vperm.xlu0 %408, %v223_v49   ;;  %v364_v60 = vrot.slane %v398_v1, %v462_v9  ;;  %v368_v61 = vrot.slane %v398_v1, %v470_v12  ;;  %v294_v12 = vrot.slane %v284_v58, %v462_v9 }
 0x1cc   :  { %v352_v63 = vrot.slane %v342_v53, %v472_v13  ;;  %v356_v4 = vrot.slane %v346_v54, %v472_v13  ;;  %v332_v6 = vrot.slane %v322_v56, %v458_v7  ;;  %v336_v10 = vrot.slane %v326_v57, %v458_v7 }
 0x1cd   :  { %v374_v17 = vrot.slane %v364_v60, %v462_v9  ;;  %v378_v18 = vrot.slane %v368_v61, %v462_v9 }
 0x1cf   :  { %410 = vset.pattern.permute.xlu1 %v415_v2  ;;  %v262_v2 = vrot.slane %v224_v3, %v474_v14 }
 0x1d0   :  { %278 = vperm.xlu1 %410, %v223_v49  }
 0x1d1   :  { %v272_v14 = vrot.slane %v262_v2, %v472_v13 }
 0x1d4   :  { %411 = vset.pattern.permute.xlu1 %v414_v0  ;;  %v238_v0 = vrot.slane %v224_v3, %v460_v8 }
 0x1d5   :  { %305 = vperm.xlu1 %411, %v217_v51  }
 0x1d6   :  { %v248_v8 = vrot.slane %v238_v0, %v458_v7 }
 0x24a   :  { %v253_v11 = vpop.permute.xlu1 %252  ;;  %v228_v15 = vpop.permute.xlu0 %227 }
 0x24b   :  { %v273_v19 = vmul.f32 %v268_v62, %v253_v11  ;;  %v274_v13 = vmul.f32 %v272_v14, %v253_v11  ;;  %v357_v20 = vmul.f32 %v352_v63, %v253_v11  ;;  %v358_v21 = vmul.f32 %v356_v4, %v253_v11 }
 0x24c   :  { %v249_v22 = vmul.f32 %v244_v5, %v228_v15  ;;  %v250_v23 = vmul.f32 %v248_v8, %v228_v15  ;;  %v337_v24 = vmul.f32 %v332_v6, %v228_v15  ;;  %v338_v25 = vmul.f32 %v336_v10, %v228_v15 }
 0x24e   :  { %v275_v26 = vadd.f32 %v273_v19, %v249_v22  ;;  %v276_v7 = vadd.f32 %v274_v13, %v250_v23  ;;  %v359_v27 = vadd.f32 %v357_v20, %v337_v24  ;;  %v360_v28 = vadd.f32 %v358_v21, %v338_v25 }
 0x24f   :  { %v279_v29 = vpop.permute.xlu1 %278 }
 0x250   :  { %v299_v30 = vmul.f32 %v294_v12, %v279_v29  ;;  %v300_v31 = vmul.f32 %v298_v16, %v279_v29  ;;  %v379_v32 = vmul.f32 %v374_v17, %v279_v29  ;;  %v380_v33 = vmul.f32 %v378_v18, %v279_v29 }
 0x252   :  { %v301_v34 = vadd.f32 %v299_v30, %v275_v26  ;;  %v302_v35 = vadd.f32 %v300_v31, %v276_v7  ;;  %v381_v9 = vadd.f32 %v379_v32, %v359_v27  ;;  %v382_v36 = vadd.f32 %v380_v33, %v360_v28 }
 0x254   :  { %v306_v37 = vpop.permute.xlu1 %305 }
 0x255   :  { %v308_v38 = vadd.f32 %v306_v37, %v301_v34  ;;  %v309_v39 = vadd.f32 %v306_v37, %v302_v35  ;;  %v383_v40 = vadd.f32 %v381_v9, %v306_v37  ;;  %v384_v41 = vadd.f32 %v382_v36, %v306_v37 }
 0x257   :  { %v310_v42 = vmax.f32 %v308_v38, 0.0  ;;  %v311_v43 = vmax.f32 %v309_v39, 0.0  ;;  %v385_v44 = vmax.f32 %v383_v40, 0.0  ;;  %v386_v45 = vmax.f32 %v384_v41, 0.0 }
 0x259   :  { %v314_v46 = vcombine.low %v310_v42, %v311_v43  ;;  %v389_v47 = vcombine.low %v385_v44, %v386_v45 }
 0x25b   :  { %316 = vst [vmem:[%s562_s4] sm:$0x77] %v314_v46  ;;  %399 = vst [vmem:[%s562_s4 + $0x8] sm:$0x77] %v389_v47 }

</bundles_post_ra>
